<compile_context>
chip_gen: v7x
topology: tpu7x:2x2x1
jax: 0.10.0
libtpu: 0.0.40
codegen_flags: <defaults>
</compile_context>

<pallas_src>
import functools

import jax
import jax.numpy as jnp
from jax.experimental import pallas as pl
from jax.experimental.pallas import tpu as pltpu


def _round_up(x: int, m: int) -> int:
    return ((x + m - 1) // m) * m


def _choose_tn(n_pad_128: int, block_n: int) -> int:
    """Widest lane tile (multiple of 128) whose padding overhead stays <= 1.5x."""
    block_n = max(128, (block_n // 128) * 128)
    tn = max(128, (min(block_n, n_pad_128) // 128) * 128)
    while tn > 128 and _round_up(n_pad_128, tn) * 2 > n_pad_128 * 3:
        tn = max(128, ((tn // 2) // 128) * 128)
    return tn


def _vmem_budget_bytes() -> int:
    """Generation-aware VMEM budget with headroom (v7x: 64 MiB phys -> ~48 MiB)."""
    try:
        phys = int(pltpu.get_tpu_info().vmem_capacity_bytes)
    except Exception:
        phys = 64 * 1024 * 1024  # conservative: assume the smallest (v7x) VMEM
    return min((phys * 3) // 4, 96 * 1024 * 1024)


# --------------------------------------------------------------------------- #
# Kernel
# --------------------------------------------------------------------------- #
def dist_linear_kernel(x_ref, w_ref, s_ref, out_ref, xb_scr, rs_scr, *, eps):
    # x_ref : (tb, k_pad) f32  -- resident across both outdim grid axes
    # w_ref : (k_pad, tn) bf16 -- one contiguous pre-transposed weight tile
    # s_ref : (1, tn)  f32     -- scale_factor * g / ||v|| per output column
    # xb_scr: (tb, k_pad) bf16 scratch, rs_scr: (tb, 1) f32 scratch

    # Hoisted per-batch-tile work: row norm + bf16 cast are computed once per
    # batch tile (the inner outdim axis is "arbitrary" => sequential sweep) and
    # reused for every outdim tile.  Exact (non-approx) reciprocal for parity.
    @pl.when(pl.program_id(2) == 0)
    def _():
        x = x_ref[...]
        rs_scr[...] = 1.0 / (jnp.sqrt(jnp.sum(x * x, axis=1, keepdims=True)) + eps)
        xb_scr[...] = x.astype(jnp.bfloat16)

    # bf16 MXU matmul against the raw (un-normalized, pre-transposed) weight.
    acc = jnp.dot(xb_scr[...], w_ref[...], preferred_element_type=jnp.float32)

    # Fold input norm, weight norm, g and scale_factor in as post-scales.
    out_ref[...] = (acc * rs_scr[...] * s_ref[...]).astype(out_ref.dtype)


# --------------------------------------------------------------------------- #
# One-time (weight-static) preparation -- hoisted out of the per-call path
# --------------------------------------------------------------------------- #
def prepare_dist_linear_weights(weight_v, weight_g, *, scale_factor, eps=1e-5,
                                block_n=512):
    outdim, indim = weight_v.shape

    v32 = weight_v.astype(jnp.float32)
    inv_vnorm = jax.lax.rsqrt(jnp.sum(v32 * v32, axis=1))                  # (outdim,)
    col_scale = (jnp.float32(scale_factor)
                 * weight_g.reshape(-1).astype(jnp.float32) * inv_vnorm)   # (outdim,)

    k_pad = _round_up(indim, 128)
    n_pad_128 = _round_up(outdim, 128)
    tn = _choose_tn(n_pad_128, block_n)
    n_pad = _round_up(n_pad_128, tn)
    n_tiles = n_pad // tn

    # Pre-transposed bf16 weight, padded, then regrouped so that each (k_pad, tn)
    # tile is one contiguous HBM region -> a single large DMA per weight tile.
    w_t = jnp.pad(v32.T.astype(jnp.bfloat16),
                  ((0, k_pad - indim), (0, n_pad - outdim)))               # (k_pad, n_pad)
    w_tiles = w_t.reshape(k_pad, n_tiles, tn).transpose(1, 0, 2)           # (n_tiles, k_pad, tn)
    s_p = jnp.pad(col_scale, (0, n_pad - outdim)).reshape(1, n_pad)        # (1, n_pad)

    return dict(w_tiles=w_tiles, col_scale=s_p, indim=indim, outdim=outdim,
                k_pad=k_pad, n_pad=n_pad, tn=tn, eps=float(eps))


# --------------------------------------------------------------------------- #
# Per-call apply
# --------------------------------------------------------------------------- #
def dist_linear_apply(x, prepped, *, block_b=512, out_dtype=jnp.float32,
                      weight_buffers=2):
    B, indim = x.shape
    assert indim == prepped["indim"]
    k_pad, n_pad, tn = prepped["k_pad"], prepped["n_pad"], prepped["tn"]
    outdim, eps = prepped["outdim"], prepped["eps"]
    n_tiles = n_pad // tn
    out_itemsize = jnp.dtype(out_dtype).itemsize

    # Batch tile: as large as the VMEM budget allows (fewer weight re-streams).
    tb = min(_round_up(max(block_b, 8), 8), _round_up(B, 8))
    budget = _vmem_budget_bytes()
    w_bufs = max(int(weight_buffers), 2)

    def vmem_est(tb_):
        return (2 * tb_ * k_pad * 4            # x input (f32, double-buffered)
                + tb_ * k_pad * 2              # bf16 x scratch
                + tb_ * 128 * 4                # row-scale scratch (lane-padded)
                + w_bufs * k_pad * tn * 2      # weight tiles
                + 2 * tb_ * tn * out_itemsize  # output tiles
                + 2 * tn * 4)                  # col-scale tile

    while tb > 8 and vmem_est(tb) > budget:
        tb = max(8, _round_up(tb // 2, 8))

    b_pad = _round_up(B, tb)
    grid_b = b_pad // tb
    # Keep both v7x TensorCores busy when the batch axis has a single tile.
    grid_no = 2 if (grid_b == 1 and n_tiles % 2 == 0) else 1
    grid_ni = n_tiles // grid_no

    x_p = jnp.pad(x.astype(jnp.float32), ((0, b_pad - B), (0, k_pad - indim)))

    w_spec_kwargs = {}
    if w_bufs > 2:
        # Only if profiling shows exposed weight DMA (x is resident, out is small).
        w_spec_kwargs["pipeline_mode"] = pl.Buffered(w_bufs)

    kernel = functools.partial(dist_linear_kernel, eps=eps)

    out_p = pl.pallas_call(
        kernel,
        out_shape=jax.ShapeDtypeStruct((b_pad, n_pad), out_dtype),
        grid_spec=pltpu.PrefetchScalarGridSpec(
            num_scalar_prefetch=0,
            grid=(grid_b, grid_no, grid_ni),
            in_specs=[
                # x rows, full K; resident across both outdim axes.
                pl.BlockSpec((tb, k_pad), lambda i, jo, ji: (i, 0)),
                # Contiguous weight tile (leading group dim squeezed).
                pl.BlockSpec((None, k_pad, tn),
                             lambda i, jo, ji: (jo * grid_ni + ji, 0, 0),
                             **w_spec_kwargs),
                # Per-column scale tile.
                pl.BlockSpec((1, tn), lambda i, jo, ji: (0, jo * grid_ni + ji)),
            ],
            out_specs=pl.BlockSpec((tb, tn),
                                   lambda i, jo, ji: (i, jo * grid_ni + ji)),
            scratch_shapes=[
                pltpu.VMEM((tb, k_pad), jnp.bfloat16),   # bf16 x, reused across j
                pltpu.VMEM((tb, 1), jnp.float32),        # 1/(||x||+eps), reused
            ],
        ),
        compiler_params=pltpu.CompilerParams(
            dimension_semantics=("parallel", "parallel", "arbitrary"),
            vmem_limit_bytes=budget,
        ),
        cost_estimate=pl.CostEstimate(
            flops=2 * b_pad * k_pad * n_pad,
            transcendentals=b_pad,
            bytes_accessed=(b_pad * k_pad * 4
                            + grid_b * n_pad * k_pad * 2
                            + b_pad * n_pad * out_itemsize
                            + n_pad * 4),
        ),
    )(x_p, prepped["w_tiles"], prepped["col_scale"])

    return out_p[:B, :outdim]


def dist_linear(x, weight_v, weight_g, *, scale_factor, eps=1e-5,
                block_b=512, block_n=512, out_dtype=jnp.float32):
    """Convenience wrapper: prep + apply (prefer calling prep once for inference)."""
    prepped = prepare_dist_linear_weights(weight_v, weight_g,
                                          scale_factor=scale_factor,
                                          eps=eps, block_n=block_n)
    return dist_linear_apply(x, prepped, block_b=block_b, out_dtype=out_dtype)


def dist_linear_ref(x, weight_v, weight_g, *, scale_factor, eps=1e-5):
    x_norm = jnp.linalg.norm(x, axis=1, keepdims=True)
    x_n = x / (x_norm + eps)
    v_norm = jnp.linalg.norm(weight_v, axis=1, keepdims=True)
    w = weight_g * weight_v / v_norm
    return scale_factor * (x_n @ w.T)


if __name__ == "__main__":
    # Small shapes consistent with distLinear(indim, outdim).
    B, indim, outdim = 8, 32, 16
    scale_factor = 2.0 if outdim <= 200 else 10.0

    key = jax.random.PRNGKey(0)
    kx, kv, kg = jax.random.split(key, 3)

    x = jax.random.normal(kx, (B, indim), dtype=jnp.float32)
    weight_v = jax.random.normal(kv, (outdim, indim), dtype=jnp.float32) * 0.1

    # Case 1: PyTorch WeightNorm initialization (g = ||v||_row, so W == v).
    weight_g_init = jnp.linalg.norm(weight_v, axis=1, keepdims=True)
    # Case 2: random g, so the g/||v|| folding is actually exercised.
    weight_g_rand = jax.random.uniform(
        kg, (outdim, 1), dtype=jnp.float32, minval=0.5, maxval=1.5
    )

    ok = True
    for name, weight_g in (("init_g", weight_g_init), ("rand_g", weight_g_rand)):
        # One-time weight prep, then the per-call kernel.
        prepped = prepare_dist_linear_weights(weight_v, weight_g,
                                              scale_factor=scale_factor)
        out = dist_linear_apply(x, prepped)
        out = jax.block_until_ready(out)
        ref = dist_linear_ref(x, weight_v, weight_g, scale_factor=scale_factor)
        assert out.shape == (B, outdim)
        # Tolerance loosened for bf16 MXU operands (f32 accumulation / norms).
        if not jnp.allclose(out, ref, atol=5e-2, rtol=5e-2):
            ok = False
            print(f"{name}: max abs err {jnp.max(jnp.abs(out - ref))}")

    assert ok
    print("KERNEL_OK")
</pallas_src>

<mosaic_0001>
module attributes {stable_mosaic.version = 11 : i64} {
  func.func @dist_linear_kernel(%arg0: i32, %arg1: i32, %arg2: i32, %arg3: memref<8x128xf32, #tpu.memory_space<vmem>>, %arg4: memref<1x128x128xbf16, #tpu.memory_space<vmem>>, %arg5: memref<1x128xf32, #tpu.memory_space<vmem>>, %arg6: memref<8x128xf32, #tpu.memory_space<vmem>>, %arg7: memref<8x128xbf16, #tpu.memory_space<vmem>>, %arg8: memref<8x1xf32, #tpu.memory_space<vmem>>) attributes {dimension_semantics = [#tpu.dimension_semantics<parallel>, #tpu.dimension_semantics<parallel>, #tpu.dimension_semantics<arbitrary>], iteration_bounds = array<i64: 1, 1, 1>, scalar_prefetch = 0 : i64, scratch_operands = 2 : i64, tpu.core_type = #tpu.core_type<tc>, window_params = [{transform_indices = @transform_0, window_bounds = array<i64: 8, 128>}, {transform_indices = @transform_1, window_bounds = array<i64: 1, 128, 128>}, {transform_indices = @transform_2, window_bounds = array<i64: 1, 128>}, {transform_indices = @transform_3, window_bounds = array<i64: 8, 128>}]} {
    %c0_i32 = arith.constant 0 : i32
    %0 = arith.cmpi eq, %arg2, %c0_i32 : i32
    %1 = arith.extui %0 : i1 to i32
    %c0_i32_0 = arith.constant 0 : i32
    %2 = arith.cmpi ne, %1, %c0_i32_0 : i32
    scf.if %2 {
      %c0_11 = arith.constant 0 : index
      %c0_12 = arith.constant 0 : index
      %14 = vector.load %arg3[%c0_11, %c0_12] : memref<8x128xf32, #tpu.memory_space<vmem>>, vector<8x128xf32>
      %15 = arith.mulf %14, %14 : vector<8x128xf32>
      %cst_13 = arith.constant dense<0.000000e+00> : vector<8xf32>
      %16 = vector.multi_reduction <add>, %15, %cst_13 [1] : vector<8x128xf32> to vector<8xf32>
      %17 = vector.shape_cast %16 : vector<8xf32> to vector<8x1xf32>
      %18 = math.sqrt %17 : vector<8x1xf32>
      %cst_14 = arith.constant 9.99999974E-6 : f32
      %19 = vector.broadcast %cst_14 : f32 to vector<8x1xf32>
      %20 = arith.addf %18, %19 : vector<8x1xf32>
      %cst_15 = arith.constant 1.000000e+00 : f32
      %21 = vector.broadcast %cst_15 : f32 to vector<8x1xf32>
      %22 = arith.divf %21, %20 : vector<8x1xf32>
      %c0_16 = arith.constant 0 : index
      %c0_17 = arith.constant 0 : index
      %23 = vector.load %arg8[%c0_16, %c0_17] : memref<8x1xf32, #tpu.memory_space<vmem>>, vector<8x1xf32>
      tpu.vector_store %arg8[%c0_16, %c0_17], %22 {strides = array<i32>} : memref<8x1xf32, #tpu.memory_space<vmem>>, vector<8x1xf32>,
      %24 = arith.truncf %14 : vector<8x128xf32> to vector<8x128xbf16>
      %c0_18 = arith.constant 0 : index
      %c0_19 = arith.constant 0 : index
      %25 = vector.load %arg7[%c0_18, %c0_19] : memref<8x128xbf16, #tpu.memory_space<vmem>>, vector<8x128xbf16>
      tpu.vector_store %arg7[%c0_18, %c0_19], %24 {strides = array<i32>} : memref<8x128xbf16, #tpu.memory_space<vmem>>, vector<8x128xbf16>,
    } else {
    }
    %c0 = arith.constant 0 : index
    %c0_1 = arith.constant 0 : index
    %3 = vector.load %arg7[%c0, %c0_1] : memref<8x128xbf16, #tpu.memory_space<vmem>>, vector<8x128xbf16>
    %c0_2 = arith.constant 0 : index
    %c0_3 = arith.constant 0 : index
    %c0_4 = arith.constant 0 : index
    %4 = vector.load %arg4[%c0_2, %c0_3, %c0_4] : memref<1x128x128xbf16, #tpu.memory_space<vmem>>, vector<1x128x128xbf16>
    %5 = vector.shape_cast %4 : vector<1x128x128xbf16> to vector<128x128xbf16>
    %cst = arith.constant dense<0.000000e+00> : vector<8x128xf32>
    %6 = tpu.matmul %3, %5, %cst {dimension_numbers = #tpu.dot_dimension_numbers<[1], [0], [0], [1], [0, 0, 1, 1], [], []>} : vector<8x128xbf16>, vector<128x128xbf16>, vector<8x128xf32> -> vector<8x128xf32>
    %c0_5 = arith.constant 0 : index
    %c0_6 = arith.constant 0 : index
    %7 = vector.load %arg8[%c0_5, %c0_6] : memref<8x1xf32, #tpu.memory_space<vmem>>, vector<8x1xf32>
    %8 = vector.broadcast %7 : vector<8x1xf32> to vector<8x128xf32>
    %9 = arith.mulf %6, %8 : vector<8x128xf32>
    %c0_7 = arith.constant 0 : index
    %c0_8 = arith.constant 0 : index
    %10 = vector.load %arg5[%c0_7, %c0_8] : memref<1x128xf32, #tpu.memory_space<vmem>>, vector<1x128xf32>
    %11 = vector.broadcast %10 : vector<1x128xf32> to vector<8x128xf32>
    %12 = arith.mulf %9, %11 : vector<8x128xf32>
    %c0_9 = arith.constant 0 : index
    %c0_10 = arith.constant 0 : index
    %13 = vector.load %arg6[%c0_9, %c0_10] : memref<8x128xf32, #tpu.memory_space<vmem>>, vector<8x128xf32>
    tpu.vector_store %arg6[%c0_9, %c0_10], %12 {strides = array<i32>} : memref<8x128xf32, #tpu.memory_space<vmem>>, vector<8x128xf32>,
    return
  }
  func.func @transform_0(%arg0: i32, %arg1: i32, %arg2: i32) -> (i32, i32) {
    %c0_i32 = arith.constant 0 : i32
    %c0_i32_0 = arith.constant 0 : i32
    return %arg0, %c0_i32 : i32, i32
  }
  func.func @transform_1(%arg0: i32, %arg1: i32, %arg2: i32) -> (i32, i32, i32) {
    %c1_i32 = arith.constant 1 : i32
    %0 = arith.muli %arg1, %c1_i32 : i32
    %1 = arith.addi %0, %arg2 : i32
    %c0_i32 = arith.constant 0 : i32
    %c0_i32_0 = arith.constant 0 : i32
    %c0_i32_1 = arith.constant 0 : i32
    return %1, %c0_i32, %c0_i32_0 : i32, i32, i32
  }
  func.func @transform_2(%arg0: i32, %arg1: i32, %arg2: i32) -> (i32, i32) {
    %c1_i32 = arith.constant 1 : i32
    %0 = arith.muli %arg1, %c1_i32 : i32
    %1 = arith.addi %0, %arg2 : i32
    %c0_i32 = arith.constant 0 : i32
    %c0_i32_0 = arith.constant 0 : i32
    return %c0_i32, %1 : i32, i32
  }
  func.func @transform_3(%arg0: i32, %arg1: i32, %arg2: i32) -> (i32, i32) {
    %c1_i32 = arith.constant 1 : i32
    %0 = arith.muli %arg1, %c1_i32 : i32
    %1 = arith.addi %0, %arg2 : i32
    %c0_i32 = arith.constant 0 : i32
    return %arg0, %1 : i32, i32
  }
}

</mosaic_0001>

<bundles_post_ra>
// kernel: tpu_custom_call.1
= control target key start
LH: loop header
LB: loop body
LE: loop exit
PB: predicated region body
PF: predicated region fallthrough
CT: control target
= control target key end

     0   :  { %8 = vsyncpa [#allocation5], 0  ;;  %s432_s0 = inlined_call_operand.hbm [shape: f32[8,128], index: 0, kind: input, shape index: {}]   ;;  %s433_s1 = inlined_call_operand.hbm [shape: bf16[1,128,128], index: 1, kind: input, shape index: {}]   ;;  %s434_s2 = inlined_call_operand.vmem [shape: f32[1,128], index: 2, kind: input, shape index: {}]   ;;  %s435_s3 = inlined_call_operand.hbm [shape: f32[8,128], index: 3, kind: output, shape index: {}]  }
   0x1   :  { %9 = vsyncpa [#allocation8], 0 }
   0x2   :  { %10 = vsyncpa [#allocation6], 0  ;;  %s358_s12 = smov [#allocation4]   ;;  %s359_s14 = smov [#allocation7]  }
   0x3   :  { %s17_s13 = sshll.u32 %s358_s12, 4  ;;  %s30_s15 = sshll.u32 %s359_s14, 4  ;;  %s18_s13 = int_to_ptr.vmem [resolvable:$true] %s17_s13  ;;  %s386_s15 = int_to_ptr.vmem [resolvable:$true] %s30_s15 }
   0x4   :  { %s286_s18 = scalar_lea.hbm %s432_s0, 128 }
   0x5   :  { %p287_p0 = scmp.ne.s32.totalorder %s432_s0, %s286_s18  ;;  %p290_p1 = scmp.lt.u32.totalorder %s286_s18, %s432_s0 }
   0x7   :  { %p292_p2 = pnand %p290_p1, %p287_p0 }
   0x9   :  { %295 = shalt.err (!%p292_p2)
}
   0xa   :  { %s296_s23 = scalar_lea.vmem %s18_s13, 128  ;;  %p301_p4 = scmp.lt.s32.totalorder %s18_s13, %s18_s13 }
   0xb   :  { %p297_p3 = scmp.ne.s32.totalorder %s18_s13, %s296_s23  ;;  %p302_p5 = scmp.lt.s32.totalorder %s296_s23, %s296_s23 }
   0xd   :  { %p303_p6 = por %p302_p5, %p301_p4 }
   0xf   :  { %p304_p7 = pnand %p303_p6, %p297_p3 }
  0x11   :  { %307 = shalt.err (!%p304_p7)
}
  0x12   :  { %20 = dma.hbm_to_vmem [thread:$0]  %s432_s0, 128, %s18_s13, [#allocation5]  }
  0x13   :  { %s308_s28 = scalar_lea.hbm %s433_s1, 1024 }
  0x14   :  { %p309_p8 = scmp.ne.s32.totalorder %s433_s1, %s308_s28  ;;  %p312_p9 = scmp.lt.u32.totalorder %s308_s28, %s433_s1 }
  0x16   :  { %p314_p10 = pnand %p312_p9, %p309_p8 }
  0x18   :  { %317 = shalt.err (!%p314_p10)
}
  0x19   :  { %s318_s6 = scalar_lea.vmem %s386_s15, 1024  ;;  %p323_p12 = scmp.lt.s32.totalorder %s386_s15, %s386_s15 }
  0x1a   :  { %p319_p11 = scmp.ne.s32.totalorder %s386_s15, %s318_s6  ;;  %p324_p13 = scmp.lt.s32.totalorder %s318_s6, %s318_s6 }
  0x1c   :  { %p325_p0 = por %p324_p13, %p323_p12 }
  0x1e   :  { %p326_p1 = pnand %p325_p0, %p319_p11 }
  0x20   :  { %329 = shalt.err (!%p326_p1)
}
  0x21   :  { %s360_s0 = smov 64   ;;  %s361_s7 = smov 4  }
  0x22   :  { %36 = dma.hbm_to_vmem [thread:$0]  %s433_s1, 1024, %s386_s15, [#allocation8], %s360_s0, %s360_s0, %s361_s7  }
  0x23   :  { %352 = dma.done.wait [#allocation5], 128  }
  0x24   :  { %353 = vsyncadd [#allocation5], 4294967168 }
  0x25   :  { %354 = dma.done.wait [#allocation8], 1024  }
  0x26   :  { %355 = vsyncadd [#allocation8], 4294966272  ;;  %v362_v0 = vmov 0.0   ;;  %vm363_vm0 = vmmov 0   ;;  %v66_v1 = vld [vmem:[#allocation4] sm:$0xff]  ;;  %v274_v4 = vld [vmem:[#allocation7] sm:$0xff]  }
  0x27   :  { %245 = vmatprep.subr.bf16.mxu0 %v362_v0  ;;  %261 = vmatprep.mubr.msk.bf16.mxu0 %vm363_vm0, %v362_v0  ;;  %v67_v2 = vmul.f32 %v66_v1, %v66_v1  ;;  %v82_v3 = vpack.c.bf16 %v66_v1, %v66_v1  ;;  %v275_v5 = vld [vmem:[#allocation7 + $0x8] sm:$0xff]   ;;  %v276_v6 = vld [vmem:[#allocation7 + $0x10] sm:$0xff]   ;;  %v277_v7 = vld [vmem:[#allocation7 + $0x18] sm:$0xff]   ;;  %v364_v13 = vmov 0   ;;  %vm80_vm3 = vcmask 7168   ;;  %s365_s11 = smov [#allocation9]  }
  0x28   :  { %246 = vmatpush3.bf16.msra.mxu0 %v274_v4  ;;  %v278_v8 = vld [vmem:[#allocation7 + $0x20] sm:$0xff]   ;;  %v279_v9 = vld [vmem:[#allocation7 + $0x28] sm:$0xff]   ;;  %v280_v10 = vld [vmem:[#allocation7 + $0x30] sm:$0xff]   ;;  %273 = vset.pattern.permute.xlu0 %v364_v13  ;;  %s214_s12 = sshll.u32 %s365_s11, 4  ;;  %s215_s12 = int_to_ptr.vmem [resolvable:$true] %s214_s12 }
  0x29   :  { %83 = vst [vmem:[#allocation2] sm:$0xf] %v82_v3  ;;  %68 = vadd.xlane.f32.xlu0 %v67_v2  ;;  %247 = vmatprep.subr.bf16.mxu0 %v362_v0  ;;  %v281_v11 = vld [vmem:[#allocation7 + $0x38] sm:$0xff]   ;;  %v235_v27 = vld [vmem:[%s434_s2] ss:$0 sm:$0xff]  ;;  %s330_s13 = scalar_lea.vmem %s215_s12, 128  ;;  %p335_p3 = scmp.lt.s32.totalorder %s215_s12, %s215_s12 }
  0x2a   :  { %p331_p2 = scmp.ne.s32.totalorder %s215_s12, %s330_s13  ;;  %p336_p4 = scmp.lt.s32.totalorder %s330_s13, %s330_s13 }
  0x2c   :  { %248 = vmatpush3.bf16.msra.mxu0 %v275_v5  ;;  %p337_p5 = por %p336_p4, %p335_p3 }
  0x2d   :  { %249 = vmatprep.subr.bf16.mxu0 %v362_v0 }
  0x2e   :  { %p338_p6 = pnand %p337_p5, %p331_p2 }
  0x30   :  { %250 = vmatpush3.bf16.msra.mxu0 %v276_v6  ;;  %v84_v12 = vld [vmem:[#allocation2] sm:$0xf] }
  0x31   :  { %251 = vmatprep.subr.bf16.mxu0 %v362_v0 }
  0x34   :  { %252 = vmatpush3.bf16.msra.mxu0 %v277_v7 }
  0x35   :  { %253 = vmatprep.subr.bf16.mxu0 %v362_v0 }
  0x38   :  { %254 = vmatpush3.bf16.msra.mxu0 %v278_v8 }
  0x39   :  { %255 = vmatprep.subr.bf16.mxu0 %v362_v0 }
  0x3c   :  { %256 = vmatpush3.bf16.msra.mxu0 %v279_v9 }
  0x3d   :  { %257 = vmatprep.subr.bf16.mxu0 %v362_v0 }
  0x40   :  { %258 = vmatpush3.bf16.msra.mxu0 %v280_v10 }
  0x41   :  { %259 = vmatprep.subr.bf16.mxu0 %v362_v0 }
  0x44   :  { %260 = vmatpush3.bf16.msra.mxu0 %v281_v11 }
  0x47   :  { %262 = vmatmul.mubr.bf16.vlgmr.msra.gmra.mrb[0].mxu0 %v84_v12 }
  0xb6   :  { %v69_v14 = vpop.xlane.xlu0 %68 }
  0xb7   :  { %282 = vrsqrt.f32 %v69_v14  ;;  %vm72_vm1 = vcmp.eq.f32.partialorder %v69_v14, inf  ;;  %v75_v17 = vand.u32 2147483648, %v69_v14  ;;  %vm74_vm2 = vcmp.eq.f32.partialorder %v69_v14, 0.0 }
  0xc1   :  { %v283_v15 = vpop.eup %282 }
  0xc2   :  { %v71_v16 = vmul.f32 %v283_v15, %v69_v14 }
  0xc4   :  { %v73_v18 = vsel %vm72_vm1, %v69_v14, %v71_v16 }
  0xc5   :  { %v76_v19 = vsel %vm74_vm2, %v75_v17, %v73_v18 }
  0xc6   :  { %v77_v20 = vadd.f32 1e-05, %v76_v19 }
  0xc8   :  { %284 = vrcp.f32 %v77_v20 }
  0xd2   :  { %v285_v21 = vpop.eup %284 }
  0xd3   :  { %81 = vst.msk [vmem:[#allocation3] sm:$0xff] %vm80_vm3, %v285_v21 }
  0xda   :  { %v189_v22 = vld [vmem:[#allocation3] sm:$0xff] }
  0xdb   :  { %192 = vperm.xlu0 %273, %v189_v22  }
 0x11a   :  { %v183_v23 = vpop.f32.mrb[0].mxu0 }
 0x11b   :  { %v263_v24 = vpop.f32.mrb[1].mxu0 }
 0x11c   :  { %v186_v25 = vpop.f32.mrb[2].mxu0 }
 0x11d   :  { %v264_v26 = vpop.f32.mrb[3].mxu0 }
 0x15a   :  { %v193_v28 = vpop.permute.xlu0 %192 }
 0x15b   :  { %v195_v29 = vmul.f32 %v193_v28, %v183_v23 }
 0x15d   :  { %v203_v30 = vmul.f32 %v235_v27, %v195_v29 }
 0x15f   :  { %204 = vst [vmem:[#allocation9] sm:$0xff] %v203_v30 }
 0x160   :  { %341 = shalt.err (!%p338_p6)
}
 0x161   :  { %s342_s16 = scalar_lea.hbm %s435_s3, 128 }
 0x162   :  { %p343_p7 = scmp.ne.s32.totalorder %s435_s3, %s342_s16  ;;  %p346_p8 = scmp.lt.u32.totalorder %s342_s16, %s435_s3 }
 0x164   :  { %p348_p9 = pnand %p346_p8, %p343_p7 }
 0x166   :  { %351 = shalt.err (!%p348_p9)
}
 0x167   :  { %217 = dma.vmem_to_hbm [thread:$0]  %s215_s12, 128, %s435_s3, [#allocation6]  }
 0x168   :  { %356 = dma.done.wait [#allocation6], 128  }
 0x169   :  { %357 = vsyncadd [#allocation6], 4294967168 }
 0x16a   :  { %221 = vsyncpa [#allocation5], 1 }
 0x16b   :  { %222 = vsyncpa [#allocation8], 1 }
 0x16c   :  { %223 = vsyncpa [#allocation6], 1 }

</bundles_post_ra>
